<compile_context>
chip_gen: v5e
topology: v5e:2x2
jax: 0.10.0
libtpu: 0.0.40
codegen_flags: <defaults>
</compile_context>

<pallas_src>
import functools
import math

import jax
import jax.numpy as jnp
from jax.experimental import pallas as pl
from jax.experimental.pallas import tpu as pltpu

EPS = 1e-8
LOG2E = math.log2(math.e)


# ---------------------------------------------------------------------------
# TISA bias — translation-invariant, computed once outside the grid loop.
# ---------------------------------------------------------------------------
def compute_attn_bias(offsets, amplitudes, sharpness, bias, slopes, L):
    """Returns attn_bias (H, L, L) f32 with attn_bias[h,i,j] = rel_bias[h, j-i+L-1]."""
    offsets = offsets.astype(jnp.float32)
    amplitudes = amplitudes.astype(jnp.float32)
    sharpness = sharpness.astype(jnp.float32)
    bias = bias.astype(jnp.float32)
    slopes = slopes.astype(jnp.float32)

    rel = jnp.arange(-(L - 1), L, dtype=jnp.float32)                    # (2L-1,)
    z = jnp.sign(amplitudes)[:, :, None] * (
        (rel[None, None, :] - offsets[:, :, None]) / sharpness[:, :, None])
    ker = jnp.abs(amplitudes)[:, :, None] * jax.nn.sigmoid(z)           # (K, H, 2L-1)
    ker_sum = ker.sum(axis=0)                                           # (H, 2L-1)
    rel_bias = (jnp.log(ker_sum + EPS + bias[:, None])
                - jnp.abs(rel)[None, :] * slopes[:, None])              # (H, 2L-1)

    # relative -> absolute via gather on the relative-position axis.
    idx = (jnp.arange(L)[None, :] - jnp.arange(L)[:, None]) + (L - 1)   # (L, L)
    return rel_bias[:, idx]                                             # (H, L, L)


# ---------------------------------------------------------------------------
# Flash-style attention kernel with a precomputed additive bias (batched block).
# ---------------------------------------------------------------------------
def _tisa_flash_kernel(q_ref, k_ref, v_ref, bias_ref, o_ref,
                       m_sc, l_sc, acc_sc, *, scale):
    ki = pl.program_id(2)

    @pl.when(ki == 0)
    def _init():
        m_sc[...] = jnp.full_like(m_sc, -jnp.inf)
        l_sc[...] = jnp.zeros_like(l_sc)
        acc_sc[...] = jnp.zeros_like(acc_sc)

    # Blocks carry the full batch so the bias tile is fetched once per (h, qi, ki).
    q = q_ref[:, 0] * scale                     # (B, tq, d), caller dtype (bf16 -> MXU rate)
    k = k_ref[:, 0]                             # (B, tkv, d)
    v = v_ref[:, 0]                             # (B, tkv, d)
    b = bias_ref[...].astype(jnp.float32)       # (1, tq, tkv), f32 math, broadcast over B

    # Scores in base-2 space (log2(e) folded into `scale` and into the bias) so
    # both exponentials below are plain exp2 — no extra per-element multiply.
    s = jnp.einsum('bqd,bkd->bqk', q, k,
                   preferred_element_type=jnp.float32) + b              # (B, tq, tkv) f32

    m_prev = m_sc[...]
    m_new = jnp.maximum(m_prev, s.max(axis=-1, keepdims=True))
    alpha = jnp.exp2(m_prev - m_new)
    p = jnp.exp2(s - m_new)                                             # (B, tq, tkv) f32
    l_sc[...] = alpha * l_sc[...] + p.sum(axis=-1, keepdims=True)
    acc_sc[...] = alpha * acc_sc[...] + jnp.einsum(
        'bqk,bkd->bqd', p.astype(v.dtype), v,
        preferred_element_type=jnp.float32)                             # (B, tq, d) f32
    m_sc[...] = m_new

    @pl.when(ki == pl.num_programs(2) - 1)
    def _finalize():
        # Exact reciprocal: the approx EUP variant introduced >1e-3 relative error
        # in the softmax normalization and broke parity with the reference.
        inv_l = pl.reciprocal(l_sc[...], approx=False)
        o_ref[:, 0] = (acc_sc[...] * inv_l).astype(o_ref.dtype)


# ---------------------------------------------------------------------------
# Tile selection / VMEM budgeting.
# ---------------------------------------------------------------------------
def _pick_q_tile(L):
    # TQ=256 fills the 256-tall v6e/v7x MXU and halves K/V re-fetch vs 128;
    # neutral on v5e (4x128^2 MXU), so one default serves all generations.
    if L <= 256:
        return L
    for t in (256, 128, 64, 32, 16, 8):
        if L % t == 0:
            return t
    return L


def _pick_kv_tile(L):
    # KV tile is the lane axis of the bias block: multiple of 128 (or full L).
    if L <= 512:
        return L
    for t in (512, 256, 128):
        if L % t == 0:
            return t
    return L


def _workset_bytes(B, d, tq, tkv, itemsize, bias_itemsize):
    # Double-buffered q/k/v/out blocks + bias tile, f32 scratch, and the live
    # (B, tq, tkv) f32 score/probability intermediates.
    return (2 * (2 * B * tq * d + 2 * B * tkv * d) * itemsize
            + 2 * tq * tkv * bias_itemsize
            + (B * tq * d + 2 * B * tq) * 4
            + 2 * B * tq * tkv * 4)


def _fit_tiles_to_vmem(B, d, tq, tkv, itemsize, bias_itemsize, budget=40 << 20):
    # Shrink tiles (preserving divisibility and (8,128) legality) until the
    # estimated working set fits the budget (v7x has only 64 MiB VMEM per TC).
    while (_workset_bytes(B, d, tq, tkv, itemsize, bias_itemsize) > budget
           and tkv >= 256 and tkv % 256 == 0):
        tkv //= 2
    while (_workset_bytes(B, d, tq, tkv, itemsize, bias_itemsize) > budget
           and tq >= 16 and tq % 16 == 0):
        tq //= 2
    return tq, tkv


# ---------------------------------------------------------------------------
# Public entry point.
# ---------------------------------------------------------------------------
def tisa_attention(q, k, v, offsets, amplitudes, sharpness, bias, slopes,
                   *, q_tile=None, kv_tile=None, bias_dtype=None):
    B, H, L, d = q.shape

    if bias_dtype is None:
        # bf16 bias halves the dominant bias HBM stream; stay f32 when the caller
        # runs f32 so default numerics match the reference module.
        bias_dtype = jnp.bfloat16 if q.dtype == jnp.bfloat16 else jnp.float32

    # Translation-invariant part computed ONCE in plain JAX; log2(e) folded in so
    # the kernel uses exp2 directly (base-2 online softmax).
    attn_bias = (compute_attn_bias(offsets, amplitudes, sharpness, bias, slopes, L)
                 * LOG2E).astype(bias_dtype)                            # (H, L, L)

    tq = q_tile if q_tile is not None else _pick_q_tile(L)
    tkv = kv_tile if kv_tile is not None else _pick_kv_tile(L)
    # v7x has 2 TensorCores: keep the parallel extent (H * nq) >= 2 when possible.
    while H * (L // tq) < 2 and tq >= 16 and tq % 16 == 0:
        tq //= 2

    itemsize = jnp.dtype(q.dtype).itemsize
    bias_itemsize = jnp.dtype(bias_dtype).itemsize
    tq, tkv = _fit_tiles_to_vmem(B, d, tq, tkv, itemsize, bias_itemsize)
    assert L % tq == 0 and L % tkv == 0, (L, tq, tkv)
    nq, nkv = L // tq, L // tkv
    grid = (H, nq, nkv)

    q_spec = pl.BlockSpec((B, 1, tq, d), lambda h, qi, ki: (0, h, qi, 0))
    kv_spec = pl.BlockSpec((B, 1, tkv, d), lambda h, qi, ki: (0, h, ki, 0))
    bias_spec = pl.BlockSpec((1, tq, tkv), lambda h, qi, ki: (h, qi, ki))
    out_spec = pl.BlockSpec((B, 1, tq, d), lambda h, qi, ki: (0, h, qi, 0))

    work_bytes = _workset_bytes(B, d, tq, tkv, itemsize, bias_itemsize)
    # Cap at 48 MiB: 64 MiB is the whole per-TC VMEM on v7x, leave compiler headroom.
    vmem_limit = int(min(48 << 20, max(int(1.5 * work_bytes), 16 << 20)))

    cost = pl.CostEstimate(
        flops=4 * B * H * L * L * d,
        transcendentals=B * H * L * L,
        bytes_accessed=int((2 + 2 * nq) * B * H * L * d * itemsize
                           + H * L * L * bias_itemsize),
    )

    kernel = functools.partial(_tisa_flash_kernel, scale=LOG2E / math.sqrt(d))

    return pl.pallas_call(
        kernel,
        out_shape=jax.ShapeDtypeStruct((B, H, L, d), q.dtype),
        grid_spec=pltpu.PrefetchScalarGridSpec(
            num_scalar_prefetch=0,
            grid=grid,
            in_specs=[q_spec, kv_spec, kv_spec, bias_spec],
            out_specs=out_spec,
            scratch_shapes=[pltpu.VMEM((B, tq, 1), jnp.float32),   # running max (base-2)
                            pltpu.VMEM((B, tq, 1), jnp.float32),   # running denominator
                            pltpu.VMEM((B, tq, d), jnp.float32)],  # output accumulator
        ),
        compiler_params=pltpu.CompilerParams(
            dimension_semantics=("parallel", "parallel", "arbitrary"),
            vmem_limit_bytes=vmem_limit),
        cost_estimate=cost,
    )(q, k, v, attn_bias)


# ---------------------------------------------------------------------------
# Pure-JAX reference (same intended semantics, bias computed per (i, j) directly).
# ---------------------------------------------------------------------------
def tisa_reference(q, k, v, offsets, amplitudes, sharpness, bias, slopes):
    B, H, L, d = q.shape
    r = (jnp.arange(L)[None, :] - jnp.arange(L)[:, None]).astype(jnp.float32)
    z = jnp.sign(amplitudes)[:, :, None, None] * (
        (r[None, None] - offsets[:, :, None, None]) / sharpness[:, :, None, None])
    ker = jnp.abs(amplitudes)[:, :, None, None] * jax.nn.sigmoid(z)
    ker_sum = ker.sum(0)
    attn_bias = (jnp.log(ker_sum + EPS + bias[:, None, None])
                 - jnp.abs(r)[None] * slopes[:, None, None])
    s = jnp.einsum('bhid,bhjd->bhij', q, k) / math.sqrt(d) + attn_bias[None]
    p = jax.nn.softmax(s, axis=-1)
    return jnp.einsum('bhij,bhjd->bhid', p, v)


def make_slopes(H, num_position_agnostic_heads, max_fv, min_fv, p_eps=1e-8):
    num_aware = H - num_position_agnostic_heads
    first_slope = -math.log(p_eps) / (min_fv / 2.0)
    last_slope = -math.log(p_eps) / (max_fv / 2.0)
    h = jnp.arange(H, dtype=jnp.float32)
    slopes = first_slope * (last_slope / first_slope) ** (h / (num_aware - 1))
    agnostic_mask = h >= num_aware
    return jnp.where(agnostic_mask, 0.0, slopes)


if __name__ == "__main__":
    # Module config (small, deterministic)
    B, H, L, d = 2, 4, 8, 32
    K = 4                       # tisa_num_kernels
    num_position_agnostic_heads = 1
    max_field_view, min_field_view = 64.0, 4.0

    key = jax.random.PRNGKey(0)
    kq, kk, kvk, kof, kam = jax.random.split(key, 5)

    q = jax.random.normal(kq, (B, H, L, d), dtype=jnp.float32)
    k = jax.random.normal(kk, (B, H, L, d), dtype=jnp.float32)
    v = jax.random.normal(kvk, (B, H, L, d), dtype=jnp.float32)

    # Parameters, mirroring Tisa._init_weights (deterministic in-script)
    offsets = 15.0 * jax.random.normal(kof, (K, H), dtype=jnp.float32)
    amplitudes = 0.01 * jax.random.normal(kam, (K, H), dtype=jnp.float32)
    sharpness = jnp.full((K, H), 5.0, dtype=jnp.float32)
    bias = jnp.full((H,), 1.0, dtype=jnp.float32)
    slopes = make_slopes(H, num_position_agnostic_heads,
                         max_field_view, min_field_view)

    # --- f32 path: tight parity against the pure-JAX reference -------------
    ref = tisa_reference(q, k, v, offsets, amplitudes, sharpness, bias, slopes)
    out = jax.block_until_ready(
        tisa_attention(q, k, v, offsets, amplitudes, sharpness, bias, slopes))
    assert out.shape == (B, H, L, d)
    assert jnp.allclose(out, ref, rtol=2e-3, atol=2e-3), "f32 mismatch vs JAX reference"

    # --- bf16 fast path (native MXU rate); loose sanity check ---------------
    qb, kb, vb = (x.astype(jnp.bfloat16) for x in (q, k, v))
    ref_bf = tisa_reference(qb.astype(jnp.float32), kb.astype(jnp.float32),
                            vb.astype(jnp.float32),
                            offsets, amplitudes, sharpness, bias, slopes)
    out_bf = jax.block_until_ready(
        tisa_attention(qb, kb, vb, offsets, amplitudes, sharpness, bias, slopes))
    err_bf = float(jnp.max(jnp.abs(out_bf.astype(jnp.float32) - ref_bf)))
    assert err_bf < 1e-1, f"bf16 path sanity check failed: max abs err {err_bf}"

    print("KERNEL_OK")
</pallas_src>

<mosaic_0001>
module attributes {stable_mosaic.version = 11 : i64} {
  func.func @_tisa_flash_kernel(%arg0: i32, %arg1: i32, %arg2: i32, %arg3: memref<2x1x8x32xf32, #tpu.memory_space<vmem>>, %arg4: memref<2x1x8x32xf32, #tpu.memory_space<vmem>>, %arg5: memref<2x1x8x32xf32, #tpu.memory_space<vmem>>, %arg6: memref<1x8x8xf32, #tpu.memory_space<vmem>>, %arg7: memref<2x1x8x32xf32, #tpu.memory_space<vmem>>, %arg8: memref<2x8x1xf32, #tpu.memory_space<vmem>>, %arg9: memref<2x8x1xf32, #tpu.memory_space<vmem>>, %arg10: memref<2x8x32xf32, #tpu.memory_space<vmem>>) attributes {dimension_semantics = [#tpu.dimension_semantics<parallel>, #tpu.dimension_semantics<parallel>, #tpu.dimension_semantics<arbitrary>], iteration_bounds = array<i64: 4, 1, 1>, scalar_prefetch = 0 : i64, scratch_operands = 3 : i64, tpu.core_type = #tpu.core_type<tc>, window_params = [{transform_indices = @transform_0, window_bounds = array<i64: 2, 1, 8, 32>}, {transform_indices = @transform_1, window_bounds = array<i64: 2, 1, 8, 32>}, {transform_indices = @transform_2, window_bounds = array<i64: 2, 1, 8, 32>}, {transform_indices = @transform_3, window_bounds = array<i64: 1, 8, 8>}, {transform_indices = @transform_4, window_bounds = array<i64: 2, 1, 8, 32>}]} {
    %c0_i32 = arith.constant 0 : i32
    %0 = arith.cmpi eq, %arg2, %c0_i32 : i32
    %1 = arith.extui %0 : i1 to i32
    %c0_i32_0 = arith.constant 0 : i32
    %2 = arith.cmpi ne, %1, %c0_i32_0 : i32
    scf.if %2 {
      %cst_39 = arith.constant 0xFF800000 : f32
      %40 = vector.broadcast %cst_39 : f32 to vector<2x8x1xf32>
      %c0_40 = arith.constant 0 : index
      %c0_41 = arith.constant 0 : index
      %c0_42 = arith.constant 0 : index
      %41 = vector.load %arg8[%c0_40, %c0_41, %c0_42] : memref<2x8x1xf32, #tpu.memory_space<vmem>>, vector<2x8x1xf32>
      tpu.vector_store %arg8[%c0_40, %c0_41, %c0_42], %40 {strides = array<i32>} : memref<2x8x1xf32, #tpu.memory_space<vmem>>, vector<2x8x1xf32>,
      %cst_43 = arith.constant 0.000000e+00 : f32
      %42 = vector.broadcast %cst_43 : f32 to vector<2x8x1xf32>
      %c0_44 = arith.constant 0 : index
      %c0_45 = arith.constant 0 : index
      %c0_46 = arith.constant 0 : index
      %43 = vector.load %arg9[%c0_44, %c0_45, %c0_46] : memref<2x8x1xf32, #tpu.memory_space<vmem>>, vector<2x8x1xf32>
      tpu.vector_store %arg9[%c0_44, %c0_45, %c0_46], %42 {strides = array<i32>} : memref<2x8x1xf32, #tpu.memory_space<vmem>>, vector<2x8x1xf32>,
      %cst_47 = arith.constant 0.000000e+00 : f32
      %44 = vector.broadcast %cst_47 : f32 to vector<2x8x32xf32>
      %c0_48 = arith.constant 0 : index
      %c0_49 = arith.constant 0 : index
      %c0_50 = arith.constant 0 : index
      %45 = vector.load %arg10[%c0_48, %c0_49, %c0_50] : memref<2x8x32xf32, #tpu.memory_space<vmem>>, vector<2x8x32xf32>
      tpu.vector_store %arg10[%c0_48, %c0_49, %c0_50], %44 {strides = array<i32>} : memref<2x8x32xf32, #tpu.memory_space<vmem>>, vector<2x8x32xf32>,
    } else {
    }
    %c0 = arith.constant 0 : index
    %c0_1 = arith.constant 0 : index
    %c0_2 = arith.constant 0 : index
    %c0_3 = arith.constant 0 : index
    %3 = vector.load %arg3[%c0, %c0_1, %c0_2, %c0_3] : memref<2x1x8x32xf32, #tpu.memory_space<vmem>>, vector<2x1x8x32xf32>
    %4 = vector.shape_cast %3 : vector<2x1x8x32xf32> to vector<2x8x32xf32>
    %cst = arith.constant 0.255034864 : f32
    %5 = vector.broadcast %cst : f32 to vector<2x8x32xf32>
    %6 = arith.mulf %4, %5 : vector<2x8x32xf32>
    %c0_4 = arith.constant 0 : index
    %c0_5 = arith.constant 0 : index
    %c0_6 = arith.constant 0 : index
    %c0_7 = arith.constant 0 : index
    %7 = vector.load %arg4[%c0_4, %c0_5, %c0_6, %c0_7] : memref<2x1x8x32xf32, #tpu.memory_space<vmem>>, vector<2x1x8x32xf32>
    %8 = vector.shape_cast %7 : vector<2x1x8x32xf32> to vector<2x8x32xf32>
    %c0_8 = arith.constant 0 : index
    %c0_9 = arith.constant 0 : index
    %c0_10 = arith.constant 0 : index
    %c0_11 = arith.constant 0 : index
    %9 = vector.load %arg5[%c0_8, %c0_9, %c0_10, %c0_11] : memref<2x1x8x32xf32, #tpu.memory_space<vmem>>, vector<2x1x8x32xf32>
    %10 = vector.shape_cast %9 : vector<2x1x8x32xf32> to vector<2x8x32xf32>
    %c0_12 = arith.constant 0 : index
    %c0_13 = arith.constant 0 : index
    %c0_14 = arith.constant 0 : index
    %11 = vector.load %arg6[%c0_12, %c0_13, %c0_14] : memref<1x8x8xf32, #tpu.memory_space<vmem>>, vector<1x8x8xf32>
    "tpu.trace_start"() <{level = 10 : i32, message = "bqd,bkd->bqk"}> : () -> ()
    %cst_15 = arith.constant dense<0.000000e+00> : vector<2x8x8xf32>
    %12 = tpu.matmul %6, %8, %cst_15 {dimension_numbers = #tpu.dot_dimension_numbers<[2], [2], [1], [1], [0, 0, 0, 1, 1, 1], [0], [0]>} : vector<2x8x32xf32>, vector<2x8x32xf32>, vector<2x8x8xf32> -> vector<2x8x8xf32>
    "tpu.trace_stop"() : () -> ()
    %13 = vector.broadcast %11 : vector<1x8x8xf32> to vector<2x8x8xf32>
    %14 = arith.addf %12, %13 : vector<2x8x8xf32>
    %c0_16 = arith.constant 0 : index
    %c0_17 = arith.constant 0 : index
    %c0_18 = arith.constant 0 : index
    %15 = vector.load %arg8[%c0_16, %c0_17, %c0_18] : memref<2x8x1xf32, #tpu.memory_space<vmem>>, vector<2x8x1xf32>
    %cst_19 = arith.constant dense<0xFF800000> : vector<2x8xf32>
    %16 = vector.multi_reduction <maximumf>, %14, %cst_19 [2] : vector<2x8x8xf32> to vector<2x8xf32>
    %17 = vector.shape_cast %16 : vector<2x8xf32> to vector<2x8x1xf32>
    %18 = arith.maximumf %15, %17 : vector<2x8x1xf32>
    %19 = arith.subf %15, %18 : vector<2x8x1xf32>
    %20 = math.exp2 %19 : vector<2x8x1xf32>
    %21 = vector.broadcast %18 : vector<2x8x1xf32> to vector<2x8x8xf32>
    %22 = arith.subf %14, %21 : vector<2x8x8xf32>
    %23 = math.exp2 %22 : vector<2x8x8xf32>
    %c0_20 = arith.constant 0 : index
    %c0_21 = arith.constant 0 : index
    %c0_22 = arith.constant 0 : index
    %24 = vector.load %arg9[%c0_20, %c0_21, %c0_22] : memref<2x8x1xf32, #tpu.memory_space<vmem>>, vector<2x8x1xf32>
    %25 = arith.mulf %20, %24 : vector<2x8x1xf32>
    %cst_23 = arith.constant dense<0.000000e+00> : vector<2x8xf32>
    %26 = vector.multi_reduction <add>, %23, %cst_23 [2] : vector<2x8x8xf32> to vector<2x8xf32>
    %27 = vector.shape_cast %26 : vector<2x8xf32> to vector<2x8x1xf32>
    %28 = arith.addf %25, %27 : vector<2x8x1xf32>
    %c0_24 = arith.constant 0 : index
    %c0_25 = arith.constant 0 : index
    %c0_26 = arith.constant 0 : index
    %29 = vector.load %arg9[%c0_24, %c0_25, %c0_26] : memref<2x8x1xf32, #tpu.memory_space<vmem>>, vector<2x8x1xf32>
    tpu.vector_store %arg9[%c0_24, %c0_25, %c0_26], %28 {strides = array<i32>} : memref<2x8x1xf32, #tpu.memory_space<vmem>>, vector<2x8x1xf32>,
    %c0_27 = arith.constant 0 : index
    %c0_28 = arith.constant 0 : index
    %c0_29 = arith.constant 0 : index
    %30 = vector.load %arg10[%c0_27, %c0_28, %c0_29] : memref<2x8x32xf32, #tpu.memory_space<vmem>>, vector<2x8x32xf32>
    %31 = vector.broadcast %20 : vector<2x8x1xf32> to vector<2x8x32xf32>
    %32 = arith.mulf %31, %30 : vector<2x8x32xf32>
    "tpu.trace_start"() <{level = 10 : i32, message = "bqk,bkd->bqd"}> : () -> ()
    %cst_30 = arith.constant dense<0.000000e+00> : vector<2x8x32xf32>
    %33 = tpu.matmul %23, %10, %cst_30 {dimension_numbers = #tpu.dot_dimension_numbers<[2], [1], [1], [2], [0, 0, 0, 1, 1, 2], [0], [0]>} : vector<2x8x8xf32>, vector<2x8x32xf32>, vector<2x8x32xf32> -> vector<2x8x32xf32>
    "tpu.trace_stop"() : () -> ()
    %34 = arith.addf %32, %33 : vector<2x8x32xf32>
    %c0_31 = arith.constant 0 : index
    %c0_32 = arith.constant 0 : index
    %c0_33 = arith.constant 0 : index
    %35 = vector.load %arg10[%c0_31, %c0_32, %c0_33] : memref<2x8x32xf32, #tpu.memory_space<vmem>>, vector<2x8x32xf32>
    tpu.vector_store %arg10[%c0_31, %c0_32, %c0_33], %34 {strides = array<i32>} : memref<2x8x32xf32, #tpu.memory_space<vmem>>, vector<2x8x32xf32>,
    %c0_34 = arith.constant 0 : index
    %c0_35 = arith.constant 0 : index
    %c0_36 = arith.constant 0 : index
    %36 = vector.load %arg8[%c0_34, %c0_35, %c0_36] : memref<2x8x1xf32, #tpu.memory_space<vmem>>, vector<2x8x1xf32>
    tpu.vector_store %arg8[%c0_34, %c0_35, %c0_36], %18 {strides = array<i32>} : memref<2x8x1xf32, #tpu.memory_space<vmem>>, vector<2x8x1xf32>,
    %c0_i32_37 = arith.constant 0 : i32
    %37 = arith.cmpi eq, %arg2, %c0_i32_37 : i32
    %38 = arith.extui %37 : i1 to i32
    %c0_i32_38 = arith.constant 0 : i32
    %39 = arith.cmpi ne, %38, %c0_i32_38 : i32
    scf.if %39 {
      %c0_39 = arith.constant 0 : index
      %c0_40 = arith.constant 0 : index
      %c0_41 = arith.constant 0 : index
      %40 = vector.load %arg9[%c0_39, %c0_40, %c0_41] : memref<2x8x1xf32, #tpu.memory_space<vmem>>, vector<2x8x1xf32>
      %41 = tpu.reciprocal %40 : vector<2x8x1xf32> -> vector<2x8x1xf32>
      %c0_42 = arith.constant 0 : index
      %c0_43 = arith.constant 0 : index
      %c0_44 = arith.constant 0 : index
      %42 = vector.load %arg10[%c0_42, %c0_43, %c0_44] : memref<2x8x32xf32, #tpu.memory_space<vmem>>, vector<2x8x32xf32>
      %43 = vector.broadcast %41 : vector<2x8x1xf32> to vector<2x8x32xf32>
      %44 = arith.mulf %42, %43 : vector<2x8x32xf32>
      %c0_45 = arith.constant 0 : index
      %c0_46 = arith.constant 0 : index
      %c0_47 = arith.constant 0 : index
      %c0_48 = arith.constant 0 : index
      %45 = vector.load %arg7[%c0_45, %c0_46, %c0_47, %c0_48] : memref<2x1x8x32xf32, #tpu.memory_space<vmem>>, vector<2x1x8x32xf32>
      %46 = vector.shape_cast %45 : vector<2x1x8x32xf32> to vector<2x8x32xf32>
      %47 = vector.shape_cast %44 : vector<2x8x32xf32> to vector<2x1x8x32xf32>
      tpu.vector_store %arg7[%c0_45, %c0_46, %c0_47, %c0_48], %47 {strides = array<i32>} : memref<2x1x8x32xf32, #tpu.memory_space<vmem>>, vector<2x1x8x32xf32>,
    } else {
    }
    return
  }
  func.func @transform_0(%arg0: i32, %arg1: i32, %arg2: i32) -> (i32, i32, i32, i32) {
    %c0_i32 = arith.constant 0 : i32
    %c0_i32_0 = arith.constant 0 : i32
    %c0_i32_1 = arith.constant 0 : i32
    return %c0_i32, %arg0, %arg1, %c0_i32_0 : i32, i32, i32, i32
  }
  func.func @transform_1(%arg0: i32, %arg1: i32, %arg2: i32) -> (i32, i32, i32, i32) {
    %c0_i32 = arith.constant 0 : i32
    %c0_i32_0 = arith.constant 0 : i32
    %c0_i32_1 = arith.constant 0 : i32
    return %c0_i32, %arg0, %arg2, %c0_i32_0 : i32, i32, i32, i32
  }
  func.func @transform_2(%arg0: i32, %arg1: i32, %arg2: i32) -> (i32, i32, i32, i32) {
    %c0_i32 = arith.constant 0 : i32
    %c0_i32_0 = arith.constant 0 : i32
    %c0_i32_1 = arith.constant 0 : i32
    return %c0_i32, %arg0, %arg2, %c0_i32_0 : i32, i32, i32, i32
  }
  func.func @transform_3(%arg0: i32, %arg1: i32, %arg2: i32) -> (i32, i32, i32) {
    %c0_i32 = arith.constant 0 : i32
    return %arg0, %arg1, %arg2 : i32, i32, i32
  }
  func.func @transform_4(%arg0: i32, %arg1: i32, %arg2: i32) -> (i32, i32, i32, i32) {
    %c0_i32 = arith.constant 0 : i32
    %c0_i32_0 = arith.constant 0 : i32
    %c0_i32_1 = arith.constant 0 : i32
    return %c0_i32, %arg0, %arg1, %c0_i32_0 : i32, i32, i32, i32
  }
}

</mosaic_0001>

<bundles_post_ra>
// kernel: tpu_custom_call.1
= control target key start
LH: loop header
LB: loop body
LE: loop exit
PB: predicated region body
PF: predicated region fallthrough
CT: control target
= control target key end

     0   :  { %s1363_s0 = inlined_call_operand.hbm [shape: f32[2,4,8,32], index: 0, kind: input, shape index: {}]   ;;  %s1364_s1 = inlined_call_operand.hbm [shape: f32[2,4,8,32], index: 1, kind: input, shape index: {}]   ;;  %s1365_s2 = inlined_call_operand.hbm [shape: f32[2,4,8,32], index: 2, kind: input, shape index: {}]   ;;  %s1366_s3 = inlined_call_operand.hbm [shape: f32[4,8,8], index: 3, kind: input, shape index: {}]   ;;  %s1367_s4 = inlined_call_operand.hbm [shape: f32[2,4,8,32], index: 4, kind: output, shape index: {}]  }
   0x1   :  { %1375 = sst [smem:[#allocation25_spill]] %s1363_s0 }
   0x2   :  { %1376 = sst [smem:[#allocation26_spill]] %s1364_s1 }
   0x3   :  { %9 = vsyncpa [#allocation6], 0 }
   0x4   :  { %11 = vsyncpa [#allocation6 + $0x1], 0 }
   0x5   :  { %12 = vsyncpa [#allocation9], 0 }
   0x6   :  { %14 = vsyncpa [#allocation9 + $0x1], 0 }
   0x7   :  { %15 = vsyncpa [#allocation12], 0 }
   0x8   :  { %17 = vsyncpa [#allocation12 + $0x1], 0 }
   0x9   :  { %18 = vsyncpa [#allocation7], 0 }
   0xa   :  { %20 = vsyncpa [#allocation7 + $0x1], 0  ;;  %s1151_s15 = smov 0   ;;  %s1153_s16 = smov 0  }
   0xb   :  { %s1155_s17 = smov 0   ;;  %s1157_s18 = smov 0  }
   0xc   :  { %s1159_s19 = smov 0   ;;  %s1161_s20 = smov 0  }
   0xd LB: > { %1377 = sst [smem:[#allocation18_spill]] %s1095_s15  ;;  %s1182_s21 = sadd.s32 4294967295, %s1115_s20   ;;  %s1115_s20 = sphi %s1161_s20, %s26_s20   ;;  %s1111_s19 = sphi %s1159_s19, %s1398_s19   ;;  %s1107_s18 = sphi %s1157_s18, %s1397_s18   ;;  %s1103_s17 = sphi %s1155_s17, %s1396_s17   ;;  %s1099_s16 = sphi %s1153_s16, %s1400_s16   ;;  %s1095_s15 = sphi %s1151_s15, %s1399_s15  }
   0xe   : > { %1378 = sst [smem:[#allocation19_spill]] %s1103_s17  ;;  %s777_s22 = sadd.s32 4294967294, %s1115_s20  }
   0xf   : > { %1379 = sst [smem:[#allocation20_spill]] %s1111_s19  ;;  %s45_s23 = sadd.s32 1, %s1111_s19 }
  0x10   : > { %1380 = sst [smem:[#allocation21_spill]] %s1115_s20  ;;  %s54_s24 = sadd.s32 1, %s1103_s17 }
  0x11   : > { %p47_p0 = scmp.ge.s32.totalorder %s45_s23, 4  ;;  %p61_p1 = scmp.ne.s32.totalorder %s1103_s17, %s1099_s16 }
  0x12   : > { %p62_p2 = scmp.eq.s32.totalorder %s1115_s20, 0  ;;  %p67_p3 = scmp.ne.s32.totalorder %s1099_s16, %s1095_s15 }
  0x13   : > { %s1402_s23 = smov (%p47_p0, %s45_s23), 0  ;;  %p68_p5 = scmp.eq.s32.totalorder %s1182_s21, 0 }
  0x14   : > { %1381 = sst [smem:[#allocation22_spill]] %s1402_s23  ;;  %p1194_p4 = por %p62_p2, %p61_p1 }
  0x15   : > { %s49_s26 = ssub.s32 %s1111_s19, %s1402_s23  ;;  %p179_p6 = scmp.eq.s32.totalorder %s1182_s21, 3 }
  0x16   : > { %p52_p7 = scmp.eq.s32.totalorder %s49_s26, 0  ;;  %p1202_p8 = por %p68_p5, %p67_p3 }
  0x17   : > { %p1206_p9 = por %p179_p6, %p61_p1  ;;  %p185_p10 = scmp.eq.s32.totalorder %s777_s22, 3 }
  0x18   : > { %s1211_s29 = scalar_select %p52_p7, %s1103_s17, %s54_s24  }
  0x19   : > { %p1213_p11 = por %p185_p10, %p67_p3  ;;  %p831_p12 = scmp.lt.s32.totalorder %s1115_s20, 4 }
  0x1a   : > { %1385 = sst [smem:[#allocation23_spill]] %s1211_s29  ;;  %s1219_s5 = sand.u32 1, %s1103_s17  }
  0x1b   : > { %s1386_s30 = scalar_select %p1213_p11, 1, 0 }
  0x1c   : > { %s1222_s6 = sshll.u32 %s1219_s5, 4  ;;  %s1225_s7 = sshll.u32 %s1111_s19, 3 }
  0x1d   : > { %1387 = sst [smem:[#allocation24_spill]] %s1386_s30  ;;  %p1229_p13 = pnand %p831_p12, %p1194_p4 }
  0x1e   : > { %s227_s9 = sand.u32 1, %s1115_s20   ;;  %s1389_s1 = sld [smem:[#allocation26_spill]] }
  0x1f   : > { %s231_s13 = scalar_lea.vmem [#allocation8], %s1222_s6  ;;  %p788_p0 = scmp.ge.s32.totalorder %s1115_s20, 1 }
  0x20   : > { %s239_s14 = sshll.u32 %s231_s13, 4  ;;  %s228_s24 = scalar_lea.sflag [#allocation9], %s227_s9  ;;  %s240_s14 = int_to_ptr.vmem [resolvable:$true] %s239_s14 }
  0x21   : > { %s1117_s25 = smov 512   ;;  %s1118_s26 = smov 128  }
  0x22   : > { %s1119_s23 = smov 8   ;;  %p290_p1 = scmp.lt.s32.totalorder %s1115_s20, 5 }
  0x23   : > { %s1391_s0 = sld [smem:[#allocation25_spill]]  ;;  %s206_s29 = scalar_lea.sflag [#allocation6], %s1219_s5 }
  0x24   : > { %s236_s12 = scalar_lea.hbm %s1389_s1, %s1225_s7  ;;  %p1243_p2 = pnand %p788_p0, %p290_p1 }
  0x25   : > { %s237_s22 = sshll.u32 %s236_s12, 4  ;;  %s209_s1 = scalar_lea.vmem [#allocation5], %s1222_s6  ;;  %s238_s22 = int_to_ptr.hbm [resolvable:$true] %s237_s22 }
  0x26   : > { %820 = dma.hbm_to_vmem [thread:$0]  (!%p1229_p13), %s238_s22, 256, %s240_s14, %s228_s24, %s1117_s25, %s1118_s26, %s1119_s23  }
  0x27   : > { %s217_s9 = sshll.u32 %s209_s1, 4  ;;  %s258_s17 = scalar_lea.hbm %s1365_s2, %s1225_s7  ;;  %s218_s9 = int_to_ptr.vmem [resolvable:$true] %s217_s9 }
  0x28   : > { %s253_s30 = scalar_lea.vmem [#allocation10], %s1222_s6  ;;  %s259_s11 = sshll.u32 %s258_s17, 4  ;;  %s260_s11 = int_to_ptr.hbm [resolvable:$true] %s259_s11 }
  0x29   : > { %s214_s13 = scalar_lea.hbm %s1391_s0, %s1225_s7  ;;  %s261_s15 = sshll.u32 %s253_s30, 4  ;;  %s262_s15 = int_to_ptr.vmem [resolvable:$true] %s261_s15 }
  0x2a   : > { %s215_s19 = sshll.u32 %s214_s13, 4  ;;  %s786_s1 = sshll.u32 %s1219_s5, 3  ;;  %s216_s19 = int_to_ptr.hbm [resolvable:$true] %s215_s19 }
  0x2b   : > { %817 = dma.hbm_to_vmem [thread:$0]  (!%p1229_p13), %s216_s19, 256, %s218_s9, %s206_s29, %s1117_s25, %s1118_s26, %s1119_s23  }
  0x2c   : > { %823 = dma.hbm_to_vmem [thread:$0]  (!%p1229_p13), %s260_s11, 256, %s262_s15, %s228_s24, %s1117_s25, %s1118_s26, %s1119_s23  }
  0x2d   : > { %s281_s0 = scalar_lea.hbm %s1366_s3, %s1225_s7  ;;  %s275_s19 = scalar_lea.vmem [#allocation11], %s786_s1 }
  0x2e   : > { %s283_s20 = sshll.u32 %s281_s0, 4  ;;  %s285_s29 = sshll.u32 %s275_s19, 4  ;;  %s284_s20 = int_to_ptr.hbm [resolvable:$true] %s283_s20  ;;  %s286_s29 = int_to_ptr.vmem [resolvable:$true] %s285_s29 }
  0x2f   : > { %s272_s9 = scalar_lea.sflag [#allocation12], %s1219_s5  ;;  %294 = sbr.rel (%p1243_p2) target bundleno = 708 (0x2c4), region = 36 }
  0x30   : > { %826 = dma.hbm_to_vmem [thread:$0]  (!%p1229_p13), %s284_s20, 128, %s286_s29, %s272_s9  }
  0x31   : > { %s1273_s17 = sand.u32 (!%p1243_p2), 1, %s1099_s16  }
  0x32   : > { %s1276_s15 = sshll.u32 (!%p1243_p2), %s1273_s17, 4  ;;  %s297_s0 = scalar_lea.sflag (!%p1243_p2), [#allocation6], %s1273_s17 }
  0x33   : > { %s300_s23 = scalar_lea.vmem (!%p1243_p2), [#allocation5], %s1276_s15 }
  0x34   : > { %1078 = dma.done.wait (%p1202_p8), %s297_s0, 256  }
  0x35   : > { %1080 = vsyncadd (%p1202_p8), %s297_s0, 4294967040  ;;  %s306_s20 = sand.u32 1, %s1182_s21   ;;  %s310_s5 = scalar_lea.vmem [#allocation8], %s1276_s15 }
  0x36   : > { %s307_s30 = scalar_lea.sflag [#allocation9], %s306_s20 }
  0x37   : > { %1082 = dma.done.wait (%p1202_p8), %s307_s30, 512  }
  0x38   : > { %1084 = vsyncadd (%p1202_p8), %s307_s30, 4294966784  ;;  %s792_s6 = sshll.u32 %s1273_s17, 3  ;;  %s320_s7 = scalar_lea.vmem [#allocation10], %s1276_s15 }
  0x39   : > { %s327_s8 = scalar_lea.sflag [#allocation12], %s1273_s17  ;;  %s330_s24 = scalar_lea.vmem [#allocation11], %s792_s6 }
  0x3a   : > { %1086 = dma.done.wait (%p1202_p8), %s327_s8, 128  }
  0x3b   : > { %1088 = vsyncadd (%p1202_p8), %s327_s8, 4294967168  ;;  %vm380_vm0 = vcmask 261120   ;;  %v387_v0 = vld [vmem:[%s310_s5] sm:$0xff]  ;;  %v388_v2 = vld [vmem:[%s310_s5 + $0x8] sm:$0xff]  ;;  %vm375_vm1 = vcmask 7168   ;;  %v1120_v6 = vmov -inf  }
  0x3c   : > { %v383_v1 = vld [vmem:[%s300_s23] sm:$0xff]  ;;  %794 = vmatpush.xpose.msk.msra.mxu0 %vm380_vm0, %v387_v0  ;;  %796 = vmatpush.xpose.msk.msra.mxu1 %vm380_vm0, %v388_v2  ;;  %v384_v4 = vld [vmem:[%s300_s23 + $0x8] sm:$0xff]  ;;  %376 = vst.msk [vmem:[#allocation2] sm:$0xff] %vm375_vm1, %v1120_v6  ;;  %vm447_vm2 = vcmask 64512   ;;  %v1121_v14 = vmov 0   ;;  %v1122_v15 = vmov 0.0  }
  0x3d   : > { %v385_v3 = vmul.f32 0.25503486, %v383_v1  ;;  %v386_v5 = vmul.f32 0.25503486, %v384_v4  ;;  %377 = vst.msk [vmem:[#allocation2 + $0x8] sm:$0xff] %vm375_vm1, %v1120_v6  ;;  %v391_v7 = vld [vmem:[%s330_s24] sm:$0xff]  ;;  %890 = vset.pattern.permute.xlu1 %v1121_v14  ;;  %891 = vset.pattern.permute.xlu0 %v1121_v14 }
  0x3e   : > { %892 = vset.pattern.permute.xlu2 %v1121_v14  ;;  %381 = vst.msk [vmem:[#allocation4] sm:$0xff] %vm380_vm0, %v1122_v15  ;;  %v389_v26 = vld [vmem:[%s320_s7] sm:$0xff]  ;;  %v390_v27 = vld [vmem:[%s320_s7 + $0x8] sm:$0xff]  ;;  %s370_s21 = scalar_lea.vmem [#allocation13], %s1276_s15  ;;  %s801_s27 = sshll.u32 %s1107_s18, 3 }
  0x3f   : > { %795 = vmatmul.msk.f32.vlgmr.msra.gmra.mxu0 %vm380_vm0, %v385_v3  ;;  %797 = vmatmul.msk.f32.vlgmr.msra.gmra.mxu1 %vm380_vm0, %v386_v5  ;;  %378 = vst.msk [vmem:[#allocation3] sm:$0xff] %vm375_vm1, %v1122_v15  ;;  %s616_s10 = scalar_lea.hbm %s1367_s4, %s801_s27  ;;  %s617_s14 = sshll.u32 %s370_s21, 4  ;;  %s618_s14 = int_to_ptr.vmem [resolvable:$true] %s617_s14 }
  0x40   : > { %379 = vst.msk [vmem:[#allocation3 + $0x8] sm:$0xff] %vm375_vm1, %v1122_v15  ;;  %521 = vmatpush.msra.mxu2 %v389_v26  ;;  %544 = vmatpush.msra.mxu3 %v390_v27  ;;  %s619_s22 = sshll.u32 %s616_s10, 4  ;;  %s605_s11 = scalar_lea.sflag [#allocation7], %s1273_s17  ;;  %s620_s22 = int_to_ptr.hbm [resolvable:$true] %s619_s22 }
  0x41   : > { %382 = vst.msk [vmem:[#allocation4 + $0x8] sm:$0xff] %vm380_vm0, %v1122_v15  ;;  %s1039_s1 = sshra.s32 %s620_s22, 4  ;;  %s1045_s19 = scalar_lea.hbm %s1367_s4, 64  ;;  %s1040_s1 = int_to_ptr.hbm [resolvable:$true] %s1039_s1 }
  0x42   : > { %s1041_s12 = scalar_lea.hbm %s1040_s1, 16  ;;  %p1046_p6 = scmp.lt.s32.totalorder %s1040_s1, %s1367_s4 }
  0x43   : > { %v445_v16 = vld [vmem:[#allocation2] sm:$0xff]  ;;  %p1042_p3 = scmp.ne.s32.totalorder %s1040_s1, %s1041_s12  ;;  %p1047_p7 = scmp.lt.s32.totalorder %s1045_s19, %s1041_s12 }
  0x44   : > { %v446_v20 = vld [vmem:[#allocation2 + $0x8] sm:$0xff] }
  0x45   : > { %v489_v45 = vld [vmem:[#allocation4] sm:$0xff]  ;;  %p1043_p4 = pnand %p1042_p3, %p1206_p9  ;;  %p1048_p8 = por %p1047_p7, %p1046_p6 }
  0x46   : > { %v474_v36 = vld [vmem:[#allocation3] sm:$0xff] }
  0x47   : > { %v475_v40 = vld [vmem:[#allocation3 + $0x8] sm:$0xff]  ;;  %p1044_p5 = pneg %p1043_p4 }
  0x48   : > { %v490_v53 = vld [vmem:[#allocation4 + $0x8] sm:$0xff] }
  0x49   : > { %p1049_p10 = pnand %p1048_p8, %p1044_p5 }
  0xbc   : > { %v416_v8 = vpop.f32.mrf.mxu0  ;;  %v442_v10 = vpop.f32.mrf.mxu1 }
  0xbd   : > { %v417_v9 = vadd.f32 %v416_v8, %v391_v7  ;;  %v443_v12 = vadd.f32 %v442_v10, %v391_v7 }
  0xbf   : > { %v448_v11 = vsel %vm447_vm2, %v417_v9, -inf  ;;  %v451_v13 = vsel %vm447_vm2, %v443_v12, -inf }
  0xc0   : > { %449 = vmax.xlane.f32.xlu0 %v448_v11 }
  0xc8   : > { %452 = vmax.xlane.f32.xlu0 %v451_v13 }
 0x133   : > { %v450_v17 = vpop.xlane.xlu0 %449 }
 0x134   : > { %v454_v18 = vmax.f32 %v445_v16, %v450_v17 }
 0x136   : > { %v456_v19 = vsub.f32 %v445_v16, %v454_v18  ;;  %553 = vst.msk [vmem:[#allocation2] sm:$0xff] %vm375_vm1, %v454_v18  ;;  %462 = vperm.xlu1 %890, %v454_v18  }
 0x138   : > { %893 = vpow2.f32 %v456_v19 }
 0x13b   : > { %v453_v21 = vpop.xlane.xlu0 %452 }
 0x13c   : > { %v455_v22 = vmax.f32 %v446_v20, %v453_v21 }
 0x13e   : > { %v894_v23 = vpop.eup %893  ;;  %v457_v24 = vsub.f32 %v446_v20, %v455_v22  ;;  %554 = vst.msk [vmem:[#allocation2 + $0x8] sm:$0xff] %vm375_vm1, %v455_v22  ;;  %467 = vperm.xlu1 %890, %v455_v22  }
 0x13f   : > { %493 = vperm.xlu0 %891, %v894_v23   ;;  %v476_v37 = vmul.f32 %v894_v23, %v474_v36 }
 0x140   : > { %895 = vpow2.f32 %v457_v24 }
 0x146   : > { %v896_v25 = vpop.eup %895 }
 0x147   : > { %498 = vperm.xlu1 %890, %v896_v25   ;;  %v477_v41 = vmul.f32 %v896_v25, %v475_v40 }
 0x1a8   : > { %v463_v28 = vpop.permute.xlu1 %462 }
 0x1a9   : > { %v470_v29 = vsub.f32 %v417_v9, %v463_v28 }
 0x1ab   : > { %897 = vpow2.f32 %v470_v29 }
 0x1b0   : > { %v468_v30 = vpop.permute.xlu1 %467 }
 0x1b1   : > { %v898_v31 = vpop.eup %897  ;;  %v471_v32 = vsub.f32 %v443_v12, %v468_v30  ;;  %v494_v46 = vpop.permute.xlu0 %493 }
 0x1b2   : > { %798 = vmatmul.msk.f32.vlgmr.msra.gmra.mxu2 %vm447_vm2, %v898_v31  ;;  %v478_v33 = vsel %vm447_vm2, %v898_v31, 0.0  ;;  %v501_v47 = vmul.f32 %v494_v46, %v489_v45 }
 0x1b3   : > { %899 = vpow2.f32 %v471_v32  ;;  %479 = vadd.xlane.f32.xlu2 %v478_v33 }
 0x1b9   : > { %v900_v34 = vpop.eup %899  ;;  %v499_v54 = vpop.permute.xlu1 %498 }
 0x1ba   : > { %799 = vmatmul.msk.f32.vlgmr.msra.gmra.mxu3 %vm447_vm2, %v900_v34  ;;  %v481_v35 = vsel %vm447_vm2, %v900_v34, 0.0  ;;  %v502_v57 = vmul.f32 %v499_v54, %v490_v53 }
 0x1bb   : > { %482 = vadd.xlane.f32.xlu2 %v481_v35 }
 0x226   : > { %v480_v38 = vpop.xlane.xlu2 %479 }
 0x227   : > { %v484_v39 = vadd.f32 %v480_v38, %v476_v37 }
 0x229   : > { %487 = vst.msk [vmem:[#allocation3] sm:$0xff] %vm375_vm1, %v484_v39 }
 0x22e   : > { %v483_v42 = vpop.xlane.xlu2 %482 }
 0x22f   : > { %v485_v43 = vadd.f32 %v483_v42, %v477_v41 }
 0x230   : > { %v558_v44 = vld [vmem:[#allocation3] sm:$0xff] }
 0x231   : > { %488 = vst.msk [vmem:[#allocation3 + $0x8] sm:$0xff] %vm375_vm1, %v485_v43  ;;  %901 = vrcp.f32 %v558_v44  ;;  %v571_v56 = vand.u32 2147483648, %v558_v44  ;;  %v569_v59 = vand.u32 2147483647, %v558_v44  ;;  %vm565_vm4 = vweird.f32 %v558_v44 }
 0x233   : > { %v572_v0 = vor.u32 1.1754944e-38, %v571_v56  ;;  %vm570_vm6 = vcmp.eq.f32.partialorder %v569_v59, 8.507059e+37 }
 0x235   : > { %v523_v48 = vpop.f32.mrf.mxu2 }
 0x236   : > { %v549_v49 = vadd.f32 %v523_v48, %v501_v47 }
 0x237   : > { %v902_v50 = vpop.eup %901 }
 0x238   : > { %551 = vst.msk [vmem:[#allocation4] sm:$0xff] %vm380_vm0, %v549_v49  ;;  %v561_v51 = vmul.f32 %v902_v50, %v558_v44  ;;  %v559_v52 = vld [vmem:[#allocation3 + $0x8] sm:$0xff]  ;;  %vm566_vm3 = vweird.f32 %v902_v50 }
 0x239   : > { %903 = vrcp.f32 %v559_v52  ;;  %vm567_vm5 = vmor %vm565_vm4, %vm566_vm3  ;;  %v585_v5 = vand.u32 2147483648, %v559_v52  ;;  %v583_v7 = vand.u32 2147483647, %v559_v52  ;;  %vm579_vm8 = vweird.f32 %v559_v52 }
 0x23a   : > { %v562_v55 = vsub.f32 1.0, %v561_v51 }
 0x23b   : > { %v586_v9 = vor.u32 1.1754944e-38, %v585_v5  ;;  %vm584_vm10 = vcmp.eq.f32.partialorder %v583_v7, 8.507059e+37 }
 0x23c   : > { %v563_v58 = vmul.f32 %v902_v50, %v562_v55 }
 0x23d   : > { %v546_v60 = vpop.f32.mrf.mxu3 }
 0x23e   : > { %v550_v61 = vadd.f32 %v546_v60, %v502_v57  ;;  %v564_v62 = vadd.f32 %v902_v50, %v563_v58 }
 0x23f   : > { %v904_v63 = vpop.eup %903  ;;  %v588_v12 = vld [vmem:[#allocation4] sm:$0xff] }
 0x240   : > { %552 = vst.msk [vmem:[#allocation4 + $0x8] sm:$0xff] %vm380_vm0, %v550_v61  ;;  %v568_v1 = vsel %vm567_vm5, %v902_v50, %v564_v62  ;;  %v575_v2 = vmul.f32 %v904_v63, %v559_v52  ;;  %vm580_vm7 = vweird.f32 %v904_v63 }
 0x241   : > { %v573_v3 = vsel %vm570_vm6, %v572_v0, %v568_v1  ;;  %vm581_vm9 = vmor %vm579_vm8, %vm580_vm7 }
 0x242   : > { %592 = vperm.xlu2 %892, %v573_v3   ;;  %v576_v4 = vsub.f32 1.0, %v575_v2 }
 0x244   : > { %v577_v6 = vmul.f32 %v904_v63, %v576_v4 }
 0x246   : > { %v578_v8 = vadd.f32 %v904_v63, %v577_v6 }
 0x247   : > { %v589_v15 = vld [vmem:[#allocation4 + $0x8] sm:$0xff] }
 0x248   : > { %v582_v10 = vsel %vm581_vm9, %v904_v63, %v578_v8 }
 0x249   : > { %v587_v11 = vsel %vm584_vm10, %v586_v9, %v582_v10 }
 0x24a   : > { %597 = vperm.xlu1 %890, %v587_v11  }
 0x29c   : > { %v593_v13 = vpop.permute.xlu2 %592 }
 0x29d   : > { %v600_v14 = vmul.f32 %v593_v13, %v588_v12 }
 0x29f   : > { %602 = vst.msk [vmem:[%s370_s21] sm:$0xff] %vm380_vm0, %v600_v14 }
 0x2bc   : > { %v598_v16 = vpop.permute.xlu1 %597 }
 0x2bd   : > { %v601_v17 = vmul.f32 %v598_v16, %v589_v15 }
 0x2bf   : > { %603 = vst.msk [vmem:[%s370_s21 + $0x8] sm:$0xff] %vm380_vm0, %v601_v17 }
 0x2c0   : > { %1052 = shalt.err (!%p1049_p10)
}
 0x2c1   : > { %s1123_s17 = smov 128   ;;  %s1124_s15 = smov 512  }
 0x2c2   : > { %s1125_s0 = smov 8  }
 0x2c3   : > { %812 = dma.vmem_to_hbm [thread:$0]  (%p1206_p9), %s618_s14, 256, %s620_s22, %s605_s11, %s1123_s17, %s1124_s15, %s1125_s0  }
 0x2c4 PF: > { %s1392_s23 = sld [smem:[#allocation21_spill]] }
 0x2c5   : > { %s1393_s20 = sld [smem:[#allocation18_spill]] }
 0x2ca   : > { %p832_p12 = scmp.ge.s32.totalorder %s1392_s23, 2 }
 0x2cb   : > { %s634_s5 = sand.u32 1, %s1393_s20  }
 0x2cc   : > { %p828_p13 = pnand %p832_p12, %p1213_p11  ;;  %s635_s6 = scalar_lea.sflag [#allocation7], %s634_s5 }
 0x2ce   : > { %p829_p0 = pneg %p828_p13 }
 0x2d0   : > { %1090 = dma.done.wait (%p829_p0), %s635_s6, 256  }
 0x2d1   : > { %1092 = vsyncadd (%p829_p0), %s635_s6, 4294967040  ;;  %s26_s20 = sadd.s32 1, %s1392_s23   ;;  %s1395_s7 = sld [smem:[#allocation19_spill]] }
 0x2d2   : > { %p23_p1 = scmp.ge.s32.totalorder %s26_s20, 6   ;;  %s1396_s17 = sld [smem:[#allocation23_spill]] }
 0x2d3   : > { %s1397_s18 = sld [smem:[#allocation20_spill]]  ;;  %s1399_s15 = smov %s1099_s16 }
 0x2d4   : > { %s1398_s19 = sld [smem:[#allocation22_spill]]  ;;  %25 = sbr.rel (!%p23_p1) target bundleno = 13 (0xd), region = 126 }
 0x2d7   : > { %s1400_s16 = smov %s1395_s7 }
 0x2d9   :  { %641 = vsyncpa [#allocation6], 1 }
 0x2da   :  { %643 = vsyncpa [#allocation6 + $0x1], 1 }
 0x2db   :  { %644 = vsyncpa [#allocation9], 1 }
 0x2dc   :  { %646 = vsyncpa [#allocation9 + $0x1], 1 }
 0x2dd   :  { %647 = vsyncpa [#allocation12], 1 }
 0x2de   :  { %649 = vsyncpa [#allocation12 + $0x1], 1 }
 0x2df   :  { %650 = vsyncpa [#allocation7], 1 }
 0x2e0   :  { %652 = vsyncpa [#allocation7 + $0x1], 1 }

</bundles_post_ra>
